<compile_context>
chip_gen: v5e
topology: v5e:2x2
jax: 0.10.0
libtpu: 0.0.40
codegen_flags: <defaults>
</compile_context>

<pallas_src>
import functools

import numpy as np
import jax
import jax.numpy as jnp
from jax.experimental import pallas as pl
from jax.experimental.pallas import tpu as pltpu


def _round_up(x, m):
    return ((x + m - 1) // m) * m


def _nmcc_kernel(x_ref, fwd_ref, inv_ref, mask_ref, o_ref, *, b_pad, f_pad, inv_scale):
    # x_ref: (2*b_pad, N) f32 — rows [0:b_pad] = preds (zero padded), [b_pad:] = labels.
    x = x_ref[...]
    x = x - jnp.mean(x, axis=-1, keepdims=True)          # mean removal (f32)

    # One fused forward-DFT matmul (bf16 operands, f32 accumulation).
    # fwd basis columns: [cos(2*pi*t*k/P) | -sin(2*pi*t*k/P)]  (zero for padded bins)
    spec = jnp.dot(x.astype(jnp.bfloat16), fwd_ref[...],
                   preferred_element_type=jnp.float32)    # (2*b_pad, 2*f_pad)

    pr = spec[:b_pad, :f_pad]     # Re(preds_fft)
    pi = spec[:b_pad, f_pad:]     # Im(preds_fft)   (minus sign folded into basis)
    lr = spec[b_pad:, :f_pad]     # Re(labels_fft)
    li = spec[b_pad:, f_pad:]     # Im(labels_fft)

    # X = preds_fft * conj(labels_fft)
    x_re = pr * lr + pi * li
    x_im = pi * lr - pr * li

    # band energies (complex magnitude per bin); padded bins have exactly zero spectrum
    mask = mask_ref[...]                                  # (1, f_pad), 1.0 in band
    mag = jnp.sqrt(x_re * x_re + x_im * x_im)
    use_e = jnp.sum(mag * mask, axis=-1, keepdims=True)   # (b_pad, 1)
    tot_e = jnp.sum(mag, axis=-1, keepdims=True)          # use_energy + zero_energy
    ratio = jnp.where(tot_e > 0.0,
                      use_e * pl.reciprocal(tot_e, approx=True),
                      1.0)                                # energy_ratio

    # One fused inverse-DFT matmul; band mask + Hermitian weights baked into inv basis.
    xc = jnp.concatenate([x_re, x_im], axis=-1).astype(jnp.bfloat16)   # (b_pad, 2*f_pad)
    cc_raw = jnp.dot(xc, inv_ref[...], preferred_element_type=jnp.float32)  # (b_pad, P_pad)

    # max over lags; the positive constant 1/(P*(min_N-1)) commutes with max.
    max_raw = jnp.max(cc_raw, axis=-1, keepdims=True)
    max_cc = max_raw * inv_scale * pl.reciprocal(ratio, approx=True)
    o_ref[...] = max_cc


@functools.lru_cache(maxsize=None)
def _nmcc_constants(N, Fs, high_pass, low_pass):
    """DFT bases (bf16), band mask and scale, cached per config; padded lane-dense."""
    P = 2 * N                       # padded_N = max(N, N) * 2
    F = P // 2 + 1                  # rfft bins
    f_pad = _round_up(F, 128)
    p_pad = _round_up(P, 128)

    t = np.arange(N, dtype=np.float64)
    k = np.arange(F, dtype=np.float64)
    ang_f = 2.0 * np.pi * np.outer(t, k) / P              # (N, F)

    # forward basis: [cos | -sin], zero columns for padded bins
    fwd = np.zeros((N, 2 * f_pad), dtype=np.float32)
    fwd[:, :F] = np.cos(ang_f)
    fwd[:, f_pad:f_pad + F] = -np.sin(ang_f)

    # frequency band mask (torch.linspace(0, Fs/2, F) logic)
    freqs = np.linspace(0.0, Fs / 2.0, F)
    use = np.logical_and(freqs <= high_pass / 60.0, freqs >= low_pass / 60.0)
    mask = np.zeros((1, f_pad), dtype=np.float32)
    mask[0, :F] = use.astype(np.float32)

    # inverse basis with Hermitian weights (1 at DC/Nyquist, else 2) AND band mask folded in
    m = np.arange(P, dtype=np.float64)
    ang_i = 2.0 * np.pi * np.outer(k, m) / P               # (F, P)
    w = np.full((F, 1), 2.0, dtype=np.float64)
    w[0, 0] = 1.0
    w[-1, 0] = 1.0
    wm = w * use.reshape(F, 1).astype(np.float64)
    inv = np.zeros((2 * f_pad, p_pad), dtype=np.float32)
    inv[:F, :P] = wm * np.cos(ang_i)
    inv[f_pad:f_pad + F, :P] = -(wm * np.sin(ang_i))
    if p_pad > P:
        # duplicate the lag-0 column into the lane padding so jnp.max is unaffected
        inv[:, P:] = inv[:, :1]

    inv_scale = 1.0 / (float(P) * float(N - 1))            # irfft 1/P and /(min_N - 1)

    return (jnp.asarray(fwd, dtype=jnp.bfloat16),
            jnp.asarray(inv, dtype=jnp.bfloat16),
            jnp.asarray(mask),
            f_pad, p_pad, float(inv_scale))


def negative_max_cross_cov(preds, labels, Fs=30, high_pass=250, low_pass=40):
    """Pallas implementation of NegativeMaxCrossCov.forward — returns max_cc, shape (B,)."""
    assert preds.ndim == 2 and preds.shape == labels.shape
    B, N = preds.shape

    fwd, inv, mask, f_pad, p_pad, inv_scale = _nmcc_constants(N, Fs, high_pass, low_pass)

    # Stack preds/labels on the sublane axis, padded so the two halves are 8-aligned.
    b_pad = _round_up(B, 8)
    x = jnp.zeros((2 * b_pad, N), dtype=jnp.float32)
    x = x.at[:B].set(preds.astype(jnp.float32))
    x = x.at[b_pad:b_pad + B].set(labels.astype(jnp.float32))

    kernel = functools.partial(_nmcc_kernel, b_pad=b_pad, f_pad=f_pad, inv_scale=inv_scale)
    vmem_spec = pl.BlockSpec(memory_space=pltpu.MemorySpace.VMEM)

    out = pl.pallas_call(
        kernel,
        out_shape=jax.ShapeDtypeStruct((b_pad, 1), jnp.float32),
        in_specs=[vmem_spec] * 4,
        out_specs=vmem_spec,
        compiler_params=pltpu.CompilerParams(vmem_limit_bytes=48 * 1024 * 1024),
    )(x, fwd, inv, mask)
    return out[:B, 0]


def _reference_max_cc(preds, labels, Fs=30, high_pass=250, low_pass=40):
    """Pure-JAX mirror of the PyTorch forward (per-batch max_cc) for correctness check."""
    N = preds.shape[-1]
    P = 2 * N
    p_n = preds - jnp.mean(preds, axis=-1, keepdims=True)
    l_n = labels - jnp.mean(labels, axis=-1, keepdims=True)
    Pf = jnp.fft.rfft(jnp.pad(p_n, ((0, 0), (0, P - N))), axis=-1)
    Lf = jnp.fft.rfft(jnp.pad(l_n, ((0, 0), (0, P - N))), axis=-1)
    X = Pf * jnp.conj(Lf)
    Fbins = X.shape[-1]
    freqs = jnp.linspace(0.0, Fs / 2.0, Fbins)
    use = jnp.logical_and(freqs <= high_pass / 60.0, freqs >= low_pass / 60.0)
    mag = jnp.abs(X)
    use_e = jnp.sum(jnp.where(use, mag, 0.0), axis=-1)
    zero_e = jnp.sum(jnp.where(use, 0.0, mag), axis=-1)
    denom = use_e + zero_e
    ratio = jnp.where(denom > 0, use_e / denom, 1.0)
    Xz = jnp.where(use, X, 0.0)
    cc = jnp.fft.irfft(Xz, n=P, axis=-1) / (N - 1)
    return jnp.max(cc, axis=-1) / ratio


if __name__ == "__main__":
    B, T = 4, 64  # (batch, sequence length)
    key = jax.random.PRNGKey(0)
    k1, k2 = jax.random.split(key)
    preds = jax.random.normal(k1, (B, T), dtype=jnp.float32)
    labels = jax.random.normal(k2, (B, T), dtype=jnp.float32)

    out = jax.block_until_ready(negative_max_cross_cov(preds, labels))
    ref = jax.block_until_ready(_reference_max_cc(preds, labels))

    assert out.shape == (B,), out.shape
    assert np.allclose(np.asarray(out), np.asarray(ref), rtol=3e-2, atol=3e-3), (out, ref)

    print("KERNEL_OK")
</pallas_src>

<mosaic_0001>
module attributes {stable_mosaic.version = 11 : i64} {
  func.func @_nmcc_kernel(%arg0: memref<16x64xf32, #tpu.memory_space<vmem>>, %arg1: memref<64x256xbf16, #tpu.memory_space<vmem>>, %arg2: memref<256x128xbf16, #tpu.memory_space<vmem>>, %arg3: memref<1x128xf32, #tpu.memory_space<vmem>>, %arg4: memref<8x1xf32, #tpu.memory_space<vmem>>) attributes {dimension_semantics = [], scalar_prefetch = 0 : i64, scratch_operands = 0 : i64, tpu.core_type = #tpu.core_type<tc>} {
    %c0 = arith.constant 0 : index
    %c0_0 = arith.constant 0 : index
    %0 = vector.load %arg0[%c0, %c0_0] : memref<16x64xf32, #tpu.memory_space<vmem>>, vector<16x64xf32>
    %cst = arith.constant dense<0.000000e+00> : vector<16xf32>
    %1 = vector.multi_reduction <add>, %0, %cst [1] : vector<16x64xf32> to vector<16xf32>
    %2 = vector.shape_cast %1 : vector<16xf32> to vector<16x1xf32>
    %cst_1 = arith.constant 6.400000e+01 : f32
    %3 = vector.broadcast %cst_1 : f32 to vector<16x1xf32>
    %4 = arith.divf %2, %3 : vector<16x1xf32>
    %5 = vector.broadcast %4 : vector<16x1xf32> to vector<16x64xf32>
    %6 = arith.subf %0, %5 : vector<16x64xf32>
    %7 = arith.truncf %6 : vector<16x64xf32> to vector<16x64xbf16>
    %c0_2 = arith.constant 0 : index
    %c0_3 = arith.constant 0 : index
    %8 = vector.load %arg1[%c0_2, %c0_3] : memref<64x256xbf16, #tpu.memory_space<vmem>>, vector<64x256xbf16>
    %cst_4 = arith.constant dense<0.000000e+00> : vector<16x256xf32>
    %9 = tpu.matmul %7, %8, %cst_4 {dimension_numbers = #tpu.dot_dimension_numbers<[1], [0], [0], [1], [0, 0, 1, 1], [], []>} : vector<16x64xbf16>, vector<64x256xbf16>, vector<16x256xf32> -> vector<16x256xf32>
    %10 = vector.extract_strided_slice %9 {offsets = [0, 0], sizes = [8, 128], strides = [1, 1]} : vector<16x256xf32> to vector<8x128xf32>
    %11 = vector.extract_strided_slice %9 {offsets = [0, 128], sizes = [8, 128], strides = [1, 1]} : vector<16x256xf32> to vector<8x128xf32>
    %12 = vector.extract_strided_slice %9 {offsets = [8, 0], sizes = [8, 128], strides = [1, 1]} : vector<16x256xf32> to vector<8x128xf32>
    %13 = vector.extract_strided_slice %9 {offsets = [8, 128], sizes = [8, 128], strides = [1, 1]} : vector<16x256xf32> to vector<8x128xf32>
    %14 = arith.mulf %10, %12 : vector<8x128xf32>
    %15 = arith.mulf %11, %13 : vector<8x128xf32>
    %16 = arith.addf %14, %15 : vector<8x128xf32>
    %17 = arith.mulf %11, %12 : vector<8x128xf32>
    %18 = arith.mulf %10, %13 : vector<8x128xf32>
    %19 = arith.subf %17, %18 : vector<8x128xf32>
    %c0_5 = arith.constant 0 : index
    %c0_6 = arith.constant 0 : index
    %20 = vector.load %arg3[%c0_5, %c0_6] : memref<1x128xf32, #tpu.memory_space<vmem>>, vector<1x128xf32>
    %21 = arith.mulf %16, %16 : vector<8x128xf32>
    %22 = arith.mulf %19, %19 : vector<8x128xf32>
    %23 = arith.addf %21, %22 : vector<8x128xf32>
    %24 = math.sqrt %23 : vector<8x128xf32>
    %25 = vector.broadcast %20 : vector<1x128xf32> to vector<8x128xf32>
    %26 = arith.mulf %24, %25 : vector<8x128xf32>
    %cst_7 = arith.constant dense<0.000000e+00> : vector<8xf32>
    %27 = vector.multi_reduction <add>, %26, %cst_7 [1] : vector<8x128xf32> to vector<8xf32>
    %28 = vector.shape_cast %27 : vector<8xf32> to vector<8x1xf32>
    %cst_8 = arith.constant dense<0.000000e+00> : vector<8xf32>
    %29 = vector.multi_reduction <add>, %24, %cst_8 [1] : vector<8x128xf32> to vector<8xf32>
    %30 = vector.shape_cast %29 : vector<8xf32> to vector<8x1xf32>
    %cst_9 = arith.constant 0.000000e+00 : f32
    %31 = vector.broadcast %cst_9 : f32 to vector<8x1xf32>
    %32 = arith.cmpf ogt, %30, %31 : vector<8x1xf32>
    %33 = tpu.reciprocal %30 {approx = true} : vector<8x1xf32> -> vector<8x1xf32>
    %34 = arith.mulf %28, %33 : vector<8x1xf32>
    %cst_10 = arith.constant 1.000000e+00 : f32
    %35 = vector.broadcast %cst_10 : f32 to vector<8x1xf32>
    %36 = arith.select %32, %34, %35 : vector<8x1xi1>, vector<8x1xf32>
    %37 = tpu.concatenate %16, %19 in 1 : vector<8x128xf32>, vector<8x128xf32> -> vector<8x256xf32>
    %38 = arith.truncf %37 : vector<8x256xf32> to vector<8x256xbf16>
    %c0_11 = arith.constant 0 : index
    %c0_12 = arith.constant 0 : index
    %39 = vector.load %arg2[%c0_11, %c0_12] : memref<256x128xbf16, #tpu.memory_space<vmem>>, vector<256x128xbf16>
    %cst_13 = arith.constant dense<0.000000e+00> : vector<8x128xf32>
    %40 = tpu.matmul %38, %39, %cst_13 {dimension_numbers = #tpu.dot_dimension_numbers<[1], [0], [0], [1], [0, 0, 1, 1], [], []>} : vector<8x256xbf16>, vector<256x128xbf16>, vector<8x128xf32> -> vector<8x128xf32>
    %cst_14 = arith.constant dense<0xFF800000> : vector<8xf32>
    %41 = vector.multi_reduction <maximumf>, %40, %cst_14 [1] : vector<8x128xf32> to vector<8xf32>
    %42 = vector.shape_cast %41 : vector<8xf32> to vector<8x1xf32>
    %cst_15 = arith.constant 1.24007944E-4 : f32
    %43 = vector.broadcast %cst_15 : f32 to vector<8x1xf32>
    %44 = arith.mulf %42, %43 : vector<8x1xf32>
    %45 = tpu.reciprocal %36 {approx = true} : vector<8x1xf32> -> vector<8x1xf32>
    %46 = arith.mulf %44, %45 : vector<8x1xf32>
    %c0_16 = arith.constant 0 : index
    %c0_17 = arith.constant 0 : index
    %47 = vector.load %arg4[%c0_16, %c0_17] : memref<8x1xf32, #tpu.memory_space<vmem>>, vector<8x1xf32>
    tpu.vector_store %arg4[%c0_16, %c0_17], %46 {strides = array<i32>} : memref<8x1xf32, #tpu.memory_space<vmem>>, vector<8x1xf32>,
    return
  }
}

</mosaic_0001>

<bundles_post_ra>
// kernel: tpu_custom_call.1
= control target key start
LH: loop header
LB: loop body
LE: loop exit
PB: predicated region body
PF: predicated region fallthrough
CT: control target
= control target key end

     0   :  { %9 = vsyncpa [#allocation3], 0  ;;  %s639_s0 = inlined_call_operand.hbm [shape: f32[16,64], index: 0, kind: input, shape index: {}]   ;;  %s640_s1 = inlined_call_operand.hbm [shape: bf16[64,256], index: 1, kind: input, shape index: {}]   ;;  %s641_s2 = inlined_call_operand.hbm [shape: bf16[256,128], index: 2, kind: input, shape index: {}]   ;;  %s642_s3 = inlined_call_operand.vmem [shape: f32[1,128], index: 3, kind: input, shape index: {}]   ;;  %s643_s4 = inlined_call_operand.vmem [shape: f32[8,1], index: 4, kind: output, shape index: {}]  }
   0x1   :  { %10 = vsyncpa [#allocation5], 0  ;;  %s28_s17 = sshll.u32 %s640_s1, 4  ;;  %s583_s18 = smov [#allocation4]   ;;  %s29_s17 = int_to_ptr.hbm [resolvable:$true] %s28_s17 }
   0x2   :  { %s30_s19 = sshll.u32 %s583_s18, 4  ;;  %s15_s22 = sshll.u32 %s639_s0, 4  ;;  %s31_s19 = int_to_ptr.vmem [resolvable:$true] %s30_s19  ;;  %s16_s22 = int_to_ptr.hbm [resolvable:$true] %s15_s22 }
   0x3   :  { %s584_s23 = smov 128   ;;  %s585_s24 = smov 8  }
   0x4   :  { %36 = dma.hbm_to_vmem [thread:$0]  %s29_s17, 1024, %s31_s19, [#allocation5], %s584_s23, %s584_s23, %s585_s24  }
   0x5   :  { %s586_s25 = smov [#allocation2]   ;;  %s41_s29 = sshll.u32 %s641_s2, 4  ;;  %s42_s29 = int_to_ptr.hbm [resolvable:$true] %s41_s29 }
   0x6   :  { %s17_s26 = sshll.u32 %s586_s25, 4  ;;  %s587_s1 = smov [#allocation6]   ;;  %s18_s26 = int_to_ptr.vmem [resolvable:$true] %s17_s26 }
   0x7   :  { %23 = dma.hbm_to_vmem [thread:$0]  %s16_s22, 256, %s18_s26, [#allocation3], %s584_s23, %s584_s23, %s585_s24  }
   0x8   :  { %s43_s30 = sshll.u32 %s587_s1, 4  ;;  %s588_s5 = smov 64   ;;  %s44_s30 = int_to_ptr.vmem [resolvable:$true] %s43_s30 }
   0x9   :  { %s589_s6 = smov 4  }
   0xa   :  { %49 = dma.hbm_to_vmem [thread:$0]  %s42_s29, 2048, %s44_s30, [#allocation5], %s588_s5, %s588_s5, %s589_s6  }
   0xb   :  { %579 = dma.done.wait [#allocation3], 256  }
   0xc   :  { %580 = vsyncadd [#allocation3], 4294967040 }
   0xd   :  { %581 = dma.done.wait [#allocation5], 3072  }
   0xe   :  { %582 = vsyncadd [#allocation5], 4294964224  ;;  %vm67_vm0 = vcmask 523264   ;;  %v625_v0 = vld [vmem:[#allocation2] sm:$0xff]  ;;  %v473_v3 = vld [vmem:[#allocation4 + $0x34] sm:$0xf0] }
   0xf   :  { %v394_v1 = vld [vmem:[#allocation4 + $0x30] sm:$0xf]  ;;  %v68_v2 = vsel %vm67_vm0, %v625_v0, 0.0  ;;  %v472_v4 = vld [vmem:[#allocation4 + $0x34] sm:$0xf]  ;;  %v66_v8 = vld [vmem:[#allocation2 + $0x8] sm:$0xff] }
  0x10   :  { %69 = vadd.xlane.f32.xlu0 %v68_v2  ;;  %v395_v5 = vor.u32 %v473_v3, %v394_v1  ;;  %v396_v6 = vld [vmem:[#allocation4 + $0x38] sm:$0xf0]  ;;  %v71_v9 = vsel %vm67_vm0, %v66_v8, 0.0  ;;  %v386_v10 = vld [vmem:[#allocation4 + $0x20] sm:$0xf]  ;;  %v590_v27 = vmov 64.0  }
  0x11   :  { %v399_v7 = vor.u32 %v472_v4, %v396_v6  ;;  %v471_v11 = vld [vmem:[#allocation4 + $0x24] sm:$0xf0]  ;;  %v470_v12 = vld [vmem:[#allocation4 + $0x24] sm:$0xf]  ;;  %v388_v14 = vld [vmem:[#allocation4 + $0x28] sm:$0xf0]  ;;  %499 = vrcp.f32 %v590_v27 }
  0x12   :  { %141 = vmatpush.bf16.msra.mxu0 %v395_v5  ;;  %v387_v13 = vor.u32 %v471_v11, %v386_v10  ;;  %v391_v15 = vor.u32 %v470_v12, %v388_v14  ;;  %v378_v16 = vld [vmem:[#allocation4 + $0x10] sm:$0xf]  ;;  %v469_v17 = vld [vmem:[#allocation4 + $0x14] sm:$0xf0]  ;;  %v468_v18 = vld [vmem:[#allocation4 + $0x14] sm:$0xf] }
  0x13   :  { %155 = vmatpush.bf16.msra.mxu1 %v399_v7  ;;  %v379_v19 = vor.u32 %v469_v17, %v378_v16  ;;  %v380_v20 = vld [vmem:[#allocation4 + $0x18] sm:$0xf0]  ;;  %v370_v22 = vld [vmem:[#allocation4] sm:$0xf]  ;;  %v467_v23 = vld [vmem:[#allocation4 + $0x4] sm:$0xf0] }
  0x14   :  { %v383_v21 = vor.u32 %v468_v18, %v380_v20  ;;  %v466_v24 = vld [vmem:[#allocation4 + $0x4] sm:$0xf]  ;;  %v371_v25 = vor.u32 %v467_v23, %v370_v22  ;;  %v372_v26 = vld [vmem:[#allocation4 + $0x8] sm:$0xf0]  ;;  %v481_v29 = vld [vmem:[#allocation6 + $0x38] sm:$0xff]  ;;  %vm360_vm5 = vcmask 7168  }
  0x15   :  { %v375_v28 = vor.u32 %v466_v24, %v372_v26  ;;  %v489_v30 = vld [vmem:[#allocation6 + $0x78] sm:$0xff]  ;;  %329 = vmatpush.bf16.msra.mxu2 %v481_v29  ;;  %v480_v32 = vld [vmem:[#allocation6 + $0x30] sm:$0xff]  ;;  %v479_v35 = vld [vmem:[#allocation6 + $0x28] sm:$0xff] }
  0x16   :  { %142 = vmatpush.bf16.msra.mxu0 %v387_v13  ;;  %342 = vmatpush.bf16.msra.mxu3 %v489_v30  ;;  %v488_v33 = vld [vmem:[#allocation6 + $0x70] sm:$0xff]  ;;  %v487_v36 = vld [vmem:[#allocation6 + $0x68] sm:$0xff]  ;;  %v478_v38 = vld [vmem:[#allocation6 + $0x20] sm:$0xff] }
  0x17   :  { %156 = vmatpush.bf16.msra.mxu1 %v391_v15  ;;  %v500_v31 = vpop.eup %499  ;;  %v486_v39 = vld [vmem:[#allocation6 + $0x60] sm:$0xff]  ;;  %v477_v50 = vld [vmem:[#allocation6 + $0x18] sm:$0xff]  ;;  %v476_v52 = vld [vmem:[#allocation6 + $0x10] sm:$0xff] }
  0x18   :  { %72 = vadd.xlane.f32.xlu0 %v71_v9  ;;  %v75_v34 = vmul.f32 64.0, %v500_v31  ;;  %vm79_vm1 = vweird.f32 %v500_v31  ;;  %v485_v51 = vld [vmem:[#allocation6 + $0x58] sm:$0xff]  ;;  %v484_v53 = vld [vmem:[#allocation6 + $0x50] sm:$0xff]  ;;  %v475_v54 = vld [vmem:[#allocation6 + $0x8] sm:$0xff] }
  0x19   :  { %330 = vmatpush.bf16.msra.mxu2 %v480_v32  ;;  %v483_v55 = vld [vmem:[#allocation6 + $0x48] sm:$0xff]  ;;  %v474_v56 = vld [vmem:[#allocation6] sm:$0xff] }
  0x1a   :  { %143 = vmatpush.bf16.msra.mxu0 %v379_v19  ;;  %343 = vmatpush.bf16.msra.mxu3 %v488_v33  ;;  %v76_v37 = vsub.f32 1.0, %v75_v34  ;;  %v482_v57 = vld [vmem:[#allocation6 + $0x40] sm:$0xff]  ;;  %v498_v19 = vld [vmem:[%s642_s3] ss:$0 sm:$0xff] }
  0x1b   :  { %157 = vmatpush.bf16.msra.mxu1 %v383_v21 }
  0x1c   :  { %v77_v40 = vmul.f32 %v500_v31, %v76_v37 }
  0x1d   :  { %331 = vmatpush.bf16.msra.mxu2 %v479_v35 }
  0x1e   :  { %144 = vmatpush.bf16.msra.mxu0 %v371_v25  ;;  %344 = vmatpush.bf16.msra.mxu3 %v487_v36  ;;  %v78_v41 = vadd.f32 %v500_v31, %v77_v40 }
  0x1f   :  { %158 = vmatpush.bf16.msra.mxu1 %v375_v28 }
  0x20   :  { %v80_v43 = vsel %vm79_vm1, %v500_v31, %v78_v41 }
  0x21   :  { %332 = vmatpush.bf16.msra.mxu2 %v478_v38 }
  0x22   :  { %345 = vmatpush.bf16.msra.mxu3 %v486_v39 }
  0x25   :  { %333 = vmatpush.bf16.msra.mxu2 %v477_v50 }
  0x26   :  { %346 = vmatpush.bf16.msra.mxu3 %v485_v51 }
  0x29   :  { %334 = vmatpush.bf16.msra.mxu2 %v476_v52 }
  0x2a   :  { %347 = vmatpush.bf16.msra.mxu3 %v484_v53 }
  0x2d   :  { %335 = vmatpush.bf16.msra.mxu2 %v475_v54 }
  0x2e   :  { %348 = vmatpush.bf16.msra.mxu3 %v483_v55 }
  0x31   :  { %336 = vmatpush.bf16.msra.mxu2 %v474_v56 }
  0x32   :  { %349 = vmatpush.bf16.msra.mxu3 %v482_v57 }
  0x83   :  { %v70_v42 = vpop.xlane.xlu0 %69 }
  0x84   :  { %v81_v44 = vmul.f32 %v80_v43, %v70_v42 }
  0x86   :  { %v83_v47 = vsub.f32 %v625_v0, %v81_v44 }
  0x8b   :  { %v73_v45 = vpop.xlane.xlu0 %72 }
  0x8c   :  { %v82_v46 = vmul.f32 %v80_v43, %v73_v45 }
  0x8e   :  { %v84_v48 = vsub.f32 %v66_v8, %v82_v46 }
  0x90   :  { %v85_v49 = vpack.c.bf16 %v84_v48, %v83_v47 }
  0x92   :  { %400 = vmatmul.msk.bf16.vlgmr.msra.gmra.mxu0 %vm67_vm0, %v85_v49  ;;  %401 = vmatmul.msk.bf16.vlgmr.msra.gmra.mxu1 %vm67_vm0, %v85_v49 }
 0x10f   :  { %v146_v58 = vpop.f32.mrf.mxu0  ;;  %v160_v59 = vpop.f32.mrf.mxu1 }
 0x117   :  { %v148_v60 = vpop.f32.mrf.mxu0  ;;  %v162_v61 = vpop.f32.mrf.mxu1 }
 0x118   :  { %v165_v62 = vmul.f32 %v148_v60, %v146_v58  ;;  %v168_v63 = vmul.f32 %v160_v59, %v148_v60  ;;  %v166_v0 = vmul.f32 %v162_v61, %v160_v59  ;;  %v169_v1 = vmul.f32 %v162_v61, %v146_v58 }
 0x11a   :  { %v167_v2 = vadd.f32 %v166_v0, %v165_v62  ;;  %v170_v3 = vsub.f32 %v168_v63, %v169_v1 }
 0x11c   :  { %v172_v4 = vmul.f32 %v167_v2, %v167_v2  ;;  %v173_v5 = vmul.f32 %v170_v3, %v170_v3  ;;  %v199_v6 = vpack.c.bf16 %v167_v2, %v167_v2  ;;  %v200_v7 = vpack.c.bf16 %v170_v3, %v170_v3 }
 0x11e   :  { %v174_v8 = vadd.f32 %v173_v5, %v172_v4  ;;  %337 = vmatmul.bf16.vlgmr.msra.gmra.mxu2 %v199_v6  ;;  %350 = vmatmul.bf16.vlgmr.msra.gmra.mxu3 %v200_v7 }
 0x120   :  { %501 = vrsqrt.f32 %v174_v8  ;;  %vm182_vm2 = vcmp.eq.f32.partialorder %v174_v8, inf  ;;  %v185_v16 = vand.u32 2147483648, %v174_v8  ;;  %vm184_vm3 = vcmp.eq.f32.partialorder %v174_v8, 0.0 }
 0x126   :  { %v502_v9 = vpop.eup %501 }
 0x127   :  { %v176_v10 = vmul.f32 %v502_v9, %v174_v8 }
 0x129   :  { %v177_v11 = vmul.f32 %v502_v9, %v176_v10 }
 0x12b   :  { %v178_v12 = vmul.f32 0.5, %v177_v11 }
 0x12d   :  { %v179_v13 = vsub.f32 1.5, %v178_v12 }
 0x12f   :  { %v180_v14 = vmul.f32 %v502_v9, %v179_v13 }
 0x131   :  { %v181_v15 = vmul.f32 %v180_v14, %v174_v8 }
 0x133   :  { %v183_v17 = vsel %vm182_vm2, %v174_v8, %v181_v15 }
 0x134   :  { %v186_v18 = vsel %vm184_vm3, %v185_v16, %v183_v17 }
 0x135   :  { %193 = vadd.xlane.f32.xlu1 %v186_v18  ;;  %v190_v20 = vmul.f32 %v498_v19, %v186_v18 }
 0x13d   :  { %191 = vadd.xlane.f32.xlu1 %v190_v20 }
 0x1a1   :  { %v338_v21 = vpop.f32.mrf.mxu2  ;;  %v351_v22 = vpop.f32.mrf.mxu3 }
 0x1a2   :  { %v352_v23 = vadd.f32 %v351_v22, %v338_v21 }
 0x1a4   :  { %355 = vmax.xlane.f32.xlu2 %v352_v23 }
 0x1a8   :  { %v194_v26 = vpop.xlane.xlu1 %193 }
 0x1a9   :  { %v340_v24 = vpop.f32.mrf.mxu2  ;;  %v353_v25 = vpop.f32.mrf.mxu3  ;;  %503 = vrcp.f32 %v194_v26  ;;  %vm195_vm4 = vcmp.gt.f32.partialorder %v194_v26, 0.0 }
 0x1af   :  { %v504_v27 = vpop.eup %503 }
 0x1b0   :  { %v192_v28 = vpop.xlane.xlu1 %191 }
 0x1b1   :  { %v197_v29 = vmul.f32 %v504_v27, %v192_v28 }
 0x1b3   :  { %v198_v30 = vsel %vm195_vm4, %v197_v29, 1.0 }
 0x1b4   :  { %505 = vrcp.f32 %v198_v30 }
 0x1ba   :  { %v506_v33 = vpop.eup %505 }
 0x217   :  { %v356_v31 = vpop.xlane.xlu2 %355 }
 0x218   :  { %v357_v32 = vmul.f32 0.00012400794, %v356_v31 }
 0x21a   :  { %v359_v34 = vmul.f32 %v506_v33, %v357_v32 }
 0x21c   :  { %361 = vst.msk [vmem:[%s643_s4] sm:$0xff] %vm360_vm5, %v359_v34 }
 0x21d   :  { %366 = vsyncpa [#allocation3], 1 }
 0x21e   :  { %367 = vsyncpa [#allocation5], 1 }

</bundles_post_ra>
